<compile_context>
chip_gen: v7x
topology: tpu7x:2x2x1
jax: 0.10.0
libtpu: 0.0.40
codegen_flags: <defaults>
</compile_context>

<pallas_src>
import jax
import jax.numpy as jnp
from jax.experimental import pallas as pl
from jax.experimental.pallas import tpu as pltpu


def _d_sqr_kernel(x_ref, k_ref, o_ref):
    # Hot path: elementwise x * 2 * k on the VPU.
    o_ref[...] = x_ref[...] * 2 * k_ref[...]


def _round_up(a, b):
    return -(-a // b) * b


def _tile_budget():
    """(per-array tile byte target, scoped VMEM limit), gated on generation."""
    # Safe-everywhere defaults: 3 arrays x 2 pipeline buffers x 4 MiB = 24 MiB
    # of pipeline buffers, well under v7x's 64 MiB physical VMEM.
    tile_bytes = 4 * 1024 * 1024
    vmem_limit = 48 * 1024 * 1024
    try:
        info = pltpu.get_tpu_info()
        if int(info.vmem_capacity_bytes) >= 96 * 1024 * 1024:
            # v5e / v6e (128 MiB physical VMEM): bigger tiles amortize the
            # per-grid-step overhead; also lifts v5e past its 16 MiB default
            # scoped-VMEM limit.
            tile_bytes = 8 * 1024 * 1024
            vmem_limit = 64 * 1024 * 1024
    except Exception:
        pass
    return tile_bytes, vmem_limit


def d_sqr_layer(x, k):
    """Pallas implementation of d_SQR_layer.forward(x, k) = x * 2 * k."""
    assert x.shape == k.shape, "x and k must have the same shape"
    orig_shape = x.shape
    dtype = x.dtype
    total = int(x.size)

    if total == 0:
        # Degenerate empty tensor: nothing to launch.
        return (x * 2 * k).astype(dtype)

    itemsize = jnp.dtype(dtype).itemsize
    # Minimum sublane multiple per dtype: 8 (32-bit), 16 (16-bit), 32 (8-bit).
    sub = max(8, 32 // max(1, itemsize))

    # Lane-dense slab width: largest of {1024,512,256,128} dividing total so
    # the bulk path is completely copy-free (reshape only; no pad, no slice).
    tn = None
    for cand in (1024, 512, 256, 128):
        if total % cand == 0:
            tn = cand
            break
    pad = 0
    if tn is None:
        # Rare ragged tail: pad only up to one lane-width (128), slice after.
        tn = 128
        pad = _round_up(total, tn) - total

    rows = (total + pad) // tn

    tile_bytes, vmem_limit = _tile_budget()
    tm_max = max(sub, (tile_bytes // (tn * itemsize)) // sub * sub)

    if rows <= sub:
        # Tiny input: single block covering the whole array (block dim equal
        # to the full array dim is always a legal block shape).
        tm = rows
    else:
        # Aim for >= 2 grid steps (lets v7x shard the row axis over both
        # TensorCores) while staying under the per-tile byte budget.
        tm_half = _round_up(_round_up(rows, 2) // 2, sub)
        tm = min(tm_max, tm_half)

    grid = (pl.cdiv(rows, tm),)  # Pallas masks the ragged last block itself.

    xf = jnp.ravel(x)
    kf = jnp.ravel(k)
    if pad:
        xf = jnp.pad(xf, (0, pad))
        kf = jnp.pad(kf, (0, pad))
    x2 = xf.reshape(rows, tn)
    k2 = kf.reshape(rows, tn)

    spec = pl.BlockSpec((tm, tn), lambda i: (i, 0))

    launched = rows * tn
    cost = pl.CostEstimate(
        flops=2 * launched,                       # two multiplies per element
        transcendentals=0,
        bytes_accessed=3 * launched * itemsize,   # read x, read k, write out
    )

    out2 = pl.pallas_call(
        _d_sqr_kernel,
        out_shape=jax.ShapeDtypeStruct((rows, tn), dtype),
        grid=grid,
        in_specs=[spec, spec],
        out_specs=spec,
        compiler_params=pltpu.CompilerParams(
            # Independent row axis: "parallel" shards it across both
            # TensorCores on v7x; harmless on single-TC v5e/v6e.
            dimension_semantics=("parallel",),
            vmem_limit_bytes=vmem_limit,
        ),
        cost_estimate=cost,
    )(x2, k2)

    if pad:
        return out2.reshape(-1)[:total].reshape(orig_shape)
    return out2.reshape(orig_shape)


if __name__ == "__main__":
    key = jax.random.PRNGKey(0)
    kx, kk = jax.random.split(key)

    # Small NCHW shape consistent with the (shape-agnostic) forward.
    x = jax.random.normal(kx, (2, 4, 16, 16), dtype=jnp.float32)
    k = jax.random.normal(kk, (2, 4, 16, 16), dtype=jnp.float32)

    out = d_sqr_layer(x, k)
    jax.block_until_ready(out)

    ref = x * 2.0 * k
    assert out.shape == x.shape
    assert out.dtype == x.dtype
    assert jnp.allclose(out, ref, atol=1e-6, rtol=1e-6)

    # Extra sanity checks for the new code paths (multi-step grid with a
    # ragged last block, and the padded-tail fallback).
    for shape in [(3, 3, 32, 32), (2, 3, 5, 7)]:
        kx, kk = jax.random.split(jax.random.fold_in(key, shape[-1]))
        xa = jax.random.normal(kx, shape, dtype=jnp.float32)
        ka = jax.random.normal(kk, shape, dtype=jnp.float32)
        oa = d_sqr_layer(xa, ka)
        jax.block_until_ready(oa)
        assert jnp.allclose(oa, xa * 2.0 * ka, atol=1e-6, rtol=1e-6)

    print("KERNEL_OK")
</pallas_src>

<mosaic_0001>
module attributes {stable_mosaic.version = 11 : i64} {
  func.func @_d_sqr_kernel(%arg0: i32, %arg1: memref<2x1024xf32, #tpu.memory_space<vmem>>, %arg2: memref<2x1024xf32, #tpu.memory_space<vmem>>, %arg3: memref<2x1024xf32, #tpu.memory_space<vmem>>) attributes {dimension_semantics = [#tpu.dimension_semantics<parallel>], iteration_bounds = array<i64: 1>, scalar_prefetch = 0 : i64, scratch_operands = 0 : i64, tpu.core_type = #tpu.core_type<tc>, window_params = [{transform_indices = @transform_0, window_bounds = array<i64: 2, 1024>}, {transform_indices = @transform_1, window_bounds = array<i64: 2, 1024>}, {transform_indices = @transform_2, window_bounds = array<i64: 2, 1024>}]} {
    %c0 = arith.constant 0 : index
    %c0_0 = arith.constant 0 : index
    %0 = vector.load %arg1[%c0, %c0_0] : memref<2x1024xf32, #tpu.memory_space<vmem>>, vector<2x1024xf32>
    %cst = arith.constant 2.000000e+00 : f32
    %1 = vector.broadcast %cst : f32 to vector<2x1024xf32>
    %2 = arith.mulf %0, %1 : vector<2x1024xf32>
    %c0_1 = arith.constant 0 : index
    %c0_2 = arith.constant 0 : index
    %3 = vector.load %arg2[%c0_1, %c0_2] : memref<2x1024xf32, #tpu.memory_space<vmem>>, vector<2x1024xf32>
    %4 = arith.mulf %2, %3 : vector<2x1024xf32>
    %c0_3 = arith.constant 0 : index
    %c0_4 = arith.constant 0 : index
    %5 = vector.load %arg3[%c0_3, %c0_4] : memref<2x1024xf32, #tpu.memory_space<vmem>>, vector<2x1024xf32>
    tpu.vector_store %arg3[%c0_3, %c0_4], %4 {strides = array<i32>} : memref<2x1024xf32, #tpu.memory_space<vmem>>, vector<2x1024xf32>,
    return
  }
  func.func @transform_0(%arg0: i32) -> (i32, i32) {
    %c0_i32 = arith.constant 0 : i32
    %c0_i32_0 = arith.constant 0 : i32
    return %arg0, %c0_i32 : i32, i32
  }
  func.func @transform_1(%arg0: i32) -> (i32, i32) {
    %c0_i32 = arith.constant 0 : i32
    %c0_i32_0 = arith.constant 0 : i32
    return %arg0, %c0_i32 : i32, i32
  }
  func.func @transform_2(%arg0: i32) -> (i32, i32) {
    %c0_i32 = arith.constant 0 : i32
    %c0_i32_0 = arith.constant 0 : i32
    return %arg0, %c0_i32 : i32, i32
  }
}

</mosaic_0001>

<bundles_post_ra>
// kernel: tpu_custom_call.1
= control target key start
LH: loop header
LB: loop body
LE: loop exit
PB: predicated region body
PF: predicated region fallthrough
CT: control target
= control target key end

     0   :  { %7 = vsyncpa [#allocation3], 0  ;;  %s191_s0 = inlined_call_operand.hbm [shape: f32[2,1024], index: 0, kind: input, shape index: {}]   ;;  %s192_s1 = inlined_call_operand.hbm [shape: f32[2,1024], index: 1, kind: input, shape index: {}]   ;;  %s193_s2 = inlined_call_operand.hbm [shape: f32[2,1024], index: 2, kind: output, shape index: {}]  }
   0x1   :  { %8 = vsyncpa [#allocation6], 0 }
   0x2   :  { %9 = vsyncpa [#allocation4], 0  ;;  %s137_s9 = smov [#allocation2]   ;;  %s138_s11 = smov [#allocation5]  }
   0x3   :  { %s16_s10 = sshll.u32 %s137_s9, 4  ;;  %s26_s12 = sshll.u32 %s138_s11, 4  ;;  %s17_s10 = int_to_ptr.vmem [resolvable:$true] %s16_s10  ;;  %s27_s12 = int_to_ptr.vmem [resolvable:$true] %s26_s12 }
   0x4   :  { %s65_s15 = scalar_lea.hbm %s191_s0, 256 }
   0x5   :  { %p66_p0 = scmp.ne.s32.totalorder %s191_s0, %s65_s15  ;;  %p69_p1 = scmp.lt.u32.totalorder %s65_s15, %s191_s0 }
   0x7   :  { %p71_p2 = pnand %p69_p1, %p66_p0 }
   0x9   :  { %74 = shalt.err (!%p71_p2)
}
   0xa   :  { %s75_s20 = scalar_lea.vmem %s17_s10, 256  ;;  %p80_p4 = scmp.lt.s32.totalorder %s17_s10, %s17_s10 }
   0xb   :  { %p76_p3 = scmp.ne.s32.totalorder %s17_s10, %s75_s20  ;;  %p81_p5 = scmp.lt.s32.totalorder %s75_s20, %s75_s20 }
   0xd   :  { %p82_p6 = por %p81_p5, %p80_p4 }
   0xf   :  { %p83_p7 = pnand %p82_p6, %p76_p3 }
  0x11   :  { %86 = shalt.err (!%p83_p7)
}
  0x12   :  { %19 = dma.hbm_to_vmem [thread:$0]  %s191_s0, 256, %s17_s10, [#allocation3]  }
  0x13   :  { %s87_s25 = scalar_lea.hbm %s192_s1, 256 }
  0x14   :  { %p88_p8 = scmp.ne.s32.totalorder %s192_s1, %s87_s25  ;;  %p91_p9 = scmp.lt.u32.totalorder %s87_s25, %s192_s1 }
  0x16   :  { %p93_p10 = pnand %p91_p9, %p88_p8 }
  0x18   :  { %96 = shalt.err (!%p93_p10)
}
  0x19   :  { %s97_s30 = scalar_lea.vmem %s27_s12, 256  ;;  %p102_p12 = scmp.lt.s32.totalorder %s27_s12, %s27_s12 }
  0x1a   :  { %p98_p11 = scmp.ne.s32.totalorder %s27_s12, %s97_s30  ;;  %p103_p13 = scmp.lt.s32.totalorder %s97_s30, %s97_s30 }
  0x1c   :  { %p104_p0 = por %p103_p13, %p102_p12 }
  0x1e   :  { %p105_p1 = pnand %p104_p0, %p98_p11 }
  0x20   :  { %108 = shalt.err (!%p105_p1)
}
  0x21   :  { %29 = dma.hbm_to_vmem [thread:$0]  %s192_s1, 256, %s27_s12, [#allocation6]  }
  0x22   :  { %131 = dma.done.wait [#allocation3], 256  }
  0x23   :  { %132 = vsyncadd [#allocation3], 4294967040 }
  0x24   :  { %133 = dma.done.wait [#allocation6], 256  }
  0x25   :  { %134 = vsyncadd [#allocation6], 4294967040  ;;  %v36_v0 = vld [vmem:[#allocation2] sm:$0xff]  ;;  %v40_v1 = vld [vmem:[#allocation5] sm:$0xff]  ;;  %s139_s4 = smov [#allocation7]  }
  0x26   :  { %v37_v2 = vld [vmem:[#allocation2 + $0x8] sm:$0xff]  ;;  %s52_s5 = sshll.u32 %s139_s4, 4  ;;  %v38_v3 = vmul.f32 2.0, %v36_v0  ;;  %v41_v5 = vld [vmem:[#allocation5 + $0x8] sm:$0xff]  ;;  %s53_s5 = int_to_ptr.vmem [resolvable:$true] %s52_s5 }
  0x27   :  { %v39_v4 = vmul.f32 2.0, %v37_v2  ;;  %s109_s6 = scalar_lea.vmem %s53_s5, 256  ;;  %p114_p3 = scmp.lt.s32.totalorder %s53_s5, %s53_s5 }
  0x28   :  { %v42_v6 = vmul.f32 %v40_v1, %v38_v3  ;;  %p110_p2 = scmp.ne.s32.totalorder %s53_s5, %s109_s6  ;;  %p115_p4 = scmp.lt.s32.totalorder %s109_s6, %s109_s6 }
  0x29   :  { %v43_v7 = vmul.f32 %v41_v5, %v39_v4 }
  0x2a   :  { %44 = vst [vmem:[#allocation7] sm:$0xff] %v42_v6  ;;  %p116_p5 = por %p115_p4, %p114_p3 }
  0x2b   :  { %45 = vst [vmem:[#allocation7 + $0x8] sm:$0xff] %v43_v7 }
  0x2c   :  { %p117_p6 = pnand %p116_p5, %p110_p2 }
  0x2e   :  { %120 = shalt.err (!%p117_p6)
}
  0x2f   :  { %s121_s8 = scalar_lea.hbm %s193_s2, 256 }
  0x30   :  { %p122_p7 = scmp.ne.s32.totalorder %s193_s2, %s121_s8  ;;  %p125_p8 = scmp.lt.u32.totalorder %s121_s8, %s193_s2 }
  0x32   :  { %p127_p9 = pnand %p125_p8, %p122_p7 }
  0x34   :  { %130 = shalt.err (!%p127_p9)
}
  0x35   :  { %55 = dma.vmem_to_hbm [thread:$0]  %s53_s5, 256, %s193_s2, [#allocation4]  }
  0x36   :  { %135 = dma.done.wait [#allocation4], 256  }
  0x37   :  { %136 = vsyncadd [#allocation4], 4294967040 }
  0x38   :  { %59 = vsyncpa [#allocation3], 1 }
  0x39   :  { %60 = vsyncpa [#allocation6], 1 }
  0x3a   :  { %61 = vsyncpa [#allocation4], 1 }

</bundles_post_ra>
